<compile_context>
chip_gen: v5e
topology: v5e:2x2
jax: 0.10.0
libtpu: 0.0.40
codegen_flags: <defaults>
</compile_context>

<pallas_src>
import jax
import jax.numpy as jnp
from jax.experimental import pallas as pl
from jax.experimental.pallas import tpu as pltpu

_MiB = 1024 * 1024


def _pe_add_kernel(x_ref, tpe_ref, npe_ref, o_ref, pe_ref):
    """x_ref / o_ref : (TL, F) lane-dense blocks (batch dim squeezed), F = N*D.
    tpe_ref        : (TL, D) time-PE rows of this l-tile.
    npe_ref        : (1, F)  flattened node-PE, npe[0, n*D + d] = node_pe[n, d].
    pe_ref         : (TL, F) VMEM scratch holding the composed PE tile.
    """
    d = tpe_ref.shape[-1]
    n_nodes = npe_ref.shape[-1] // d

    # Compose pe[l, n*D + d] = time_pe[l, d] + node_pe[n, d] once per l-tile
    # (at b == 0 of the inner "arbitrary" batch axis); it is then reused for
    # every batch element of this l-tile.  Only static-offset slice stores
    # (no in-kernel reshape), so lowering is plain masked loads/stores + VPU.
    @pl.when(pl.program_id(1) == 0)
    def _():
        tpe = tpe_ref[...].astype(pe_ref.dtype)          # (TL, D)
        for n in range(n_nodes):                         # static unroll
            sl = slice(n * d, (n + 1) * d)
            pe_ref[:, sl] = tpe + npe_ref[:, sl].astype(pe_ref.dtype)

    # The kernel is HBM-bandwidth bound; this add (VPU) is free.
    o_ref[...] = (x_ref[...] + pe_ref[...]).astype(o_ref.dtype)


def _vmem_capacity_bytes():
    """Physical VMEM of the local TPU (64 MiB v7x, 128 MiB v5e/v6e).
    Conservative 64 MiB fallback if the query is unavailable."""
    try:
        info = pltpu.get_tpu_info()
        for attr in ("vmem_capacity_bytes", "vmem_size_bytes", "vmem_bytes"):
            v = getattr(info, attr, None)
            if v:
                return int(v)
    except Exception:
        pass
    return 64 * _MiB


def _choose_tiling(L, F, x_itemsize, pe_itemsize):
    """Pick time-steps per block (TL) and the scoped-VMEM limit, generation
    aware: budget from physical VMEM, x-tile capped at 8 MiB, dtype-aware
    sublane granule, and an even number of l-tiles for megacore sharding."""
    vmem_cap = _vmem_capacity_bytes()
    budget = min(vmem_cap * 3 // 4, 96 * _MiB)
    # Working set per time-step row: x in + out double-buffered (4x) plus one
    # copy of the composed-PE scratch (pe dtype).
    per_row = F * (4 * x_itemsize + pe_itemsize)
    cap_rows = max(1, (8 * _MiB) // max(1, F * x_itemsize))   # 8 MiB x-tile cap
    tl = max(1, min((budget - 8 * _MiB) // per_row, cap_rows))

    # Sublane granule: 8 rows for 4-byte dtypes, 16 for 2-byte, 32 for 1-byte.
    granule = max(8, 32 // x_itemsize, 32 // pe_itemsize)
    if tl >= L or L <= granule:
        tl = L                               # full extent is always legal
    else:
        tl = max(granule, (tl // granule) * granule)

    # Megacore (v7x): the l axis is the "parallel" axis -> prefer an even
    # (>= 2) l-tile count so both TensorCores get an equal share (best effort).
    if L >= 2 * granule:
        n_lt = -(-L // tl)
        if n_lt % 2 == 1:
            rows = -(-L // (n_lt + 1))
            alt = ((rows + granule - 1) // granule) * granule
            if granule <= alt <= tl and (-(-L // alt)) % 2 == 0:
                tl = alt

    vmem_limit = int(min(vmem_cap - 4 * _MiB,
                         max(32 * _MiB, tl * per_row + 16 * _MiB)))
    return tl, vmem_limit


def learnable_positional_encoding(x, time_pe, node_pe):
    """Eval-mode forward of myLearnablePositionalEncoding.

    x:       [B, L, N, D]
    time_pe: [1, max_len, 1, D]   (max_len >= L)
    node_pe: [1, 1, n_max, D]     (n_max   >= N)
    returns  [B, L, N, D] = x + time_pe[:, :L] + node_pe[:, :, :N]
    Output dtype follows x.dtype; the PE table itself is composed in the
    promoted parameter dtype inside the kernel.
    """
    B, L, N, D = x.shape
    F = N * D

    pe_dtype = jnp.promote_types(time_pe.dtype, node_pe.dtype)
    # Only tiny per-call arrays (O(L*D) and O(N*D)) are passed to the kernel;
    # the L x F combined table never makes an HBM round trip.
    tpe = time_pe[0, :L, 0, :].astype(pe_dtype)                   # (L, D)
    npe = node_pe[0, 0, :N, :].reshape(1, F).astype(pe_dtype)     # (1, F)

    # Free reshape (contiguous trailing-dim collapse) -> lane-dense blocks.
    # TODO(synk): if F = N*D is not a multiple of 128, fold part of the L tile
    #             into the lane dim to keep stores fully unmasked.
    x_flat = x.reshape(B, L, F)

    tl, vmem_limit = _choose_tiling(L, F, x.dtype.itemsize,
                                    jnp.dtype(pe_dtype).itemsize)
    grid = (pl.cdiv(L, tl), B)     # b innermost -> PE scratch reused across B

    out_flat = pl.pallas_call(
        _pe_add_kernel,
        out_shape=jax.ShapeDtypeStruct((B, L, F), x.dtype),
        grid=grid,
        in_specs=[
            pl.BlockSpec((None, tl, F), lambda l, b: (b, l, 0)),   # x (lane-dense)
            pl.BlockSpec((tl, D), lambda l, b: (l, 0)),            # time_pe rows
            pl.BlockSpec((1, F), lambda l, b: (0, 0)),             # node_pe (whole)
        ],
        out_specs=pl.BlockSpec((None, tl, F), lambda l, b: (b, l, 0)),
        scratch_shapes=[pltpu.VMEM((tl, F), pe_dtype)],            # composed PE tile
        compiler_params=pltpu.CompilerParams(
            # l axis: parallel (megacore-shardable).  b axis must stay
            # "arbitrary": the composed-PE scratch is (re)built at b == 0.
            dimension_semantics=("parallel", "arbitrary"),
            vmem_limit_bytes=vmem_limit,
        ),
    )(x_flat, tpe, npe)

    return out_flat.reshape(B, L, N, D)


def init_params(key, emb_dim, max_len=1024, n_max=1024, dtype=jnp.float32):
    k1, k2 = jax.random.split(key)
    time_pe = jax.random.uniform(k1, (1, max_len, 1, emb_dim),
                                 minval=-0.02, maxval=0.02, dtype=dtype)
    node_pe = jax.random.uniform(k2, (1, 1, n_max, emb_dim),
                                 minval=-0.02, maxval=0.02, dtype=dtype)
    return time_pe, node_pe


if __name__ == "__main__":
    key = jax.random.PRNGKey(0)
    kx, kp = jax.random.split(key)

    B, L, N, D = 2, 8, 16, 32
    x = jax.random.normal(kx, (B, L, N, D), dtype=jnp.float32)
    time_pe, node_pe = init_params(kp, emb_dim=D, max_len=64)

    out = learnable_positional_encoding(x, time_pe, node_pe)
    out = jax.block_until_ready(out)

    # Reference in plain JAX (broadcasted add; dropout = identity in eval).
    ref = x + time_pe[:, :L, :, :] + node_pe[:, :, :N, :]
    assert out.shape == (B, L, N, D)
    assert jnp.allclose(out, ref, atol=1e-6), "mismatch vs reference"

    print("KERNEL_OK")
</pallas_src>

<mosaic_0001>
module attributes {stable_mosaic.version = 11 : i64} {
  func.func @_pe_add_kernel(%arg0: i32, %arg1: i32, %arg2: memref<1x8x512xf32, #tpu.memory_space<vmem>>, %arg3: memref<8x32xf32, #tpu.memory_space<vmem>>, %arg4: memref<1x512xf32, #tpu.memory_space<vmem>>, %arg5: memref<1x8x512xf32, #tpu.memory_space<vmem>>, %arg6: memref<8x512xf32, #tpu.memory_space<vmem>>) attributes {dimension_semantics = [#tpu.dimension_semantics<parallel>, #tpu.dimension_semantics<arbitrary>], iteration_bounds = array<i64: 1, 2>, scalar_prefetch = 0 : i64, scratch_operands = 1 : i64, tpu.core_type = #tpu.core_type<tc>, window_params = [{transform_indices = @transform_0, window_bounds = array<i64: 1, 8, 512>}, {transform_indices = @transform_1, window_bounds = array<i64: 8, 32>}, {pipeline_mode = #tpu.pipeline_mode<synchronous>, transform_indices = @transform_2, window_bounds = array<i64: 1, 512>}, {transform_indices = @transform_3, window_bounds = array<i64: 1, 8, 512>}]} {
    %c0_i32 = arith.constant 0 : i32
    %0 = arith.cmpi eq, %arg1, %c0_i32 : i32
    %1 = arith.extui %0 : i1 to i32
    %c0_i32_0 = arith.constant 0 : i32
    %2 = arith.cmpi ne, %1, %c0_i32_0 : i32
    scf.if %2 {
      %c0_8 = arith.constant 0 : index
      %c0_9 = arith.constant 0 : index
      %10 = vector.load %arg3[%c0_8, %c0_9] : memref<8x32xf32, #tpu.memory_space<vmem>>, vector<8x32xf32>
      %c0_10 = arith.constant 0 : index
      %c0_11 = arith.constant 0 : index
      %11 = vector.load %arg4[%c0_10, %c0_11] : memref<1x512xf32, #tpu.memory_space<vmem>>, vector<1x32xf32>
      %12 = vector.broadcast %11 : vector<1x32xf32> to vector<8x32xf32>
      %13 = arith.addf %10, %12 : vector<8x32xf32>
      %c0_12 = arith.constant 0 : index
      %c0_13 = arith.constant 0 : index
      %14 = vector.load %arg6[%c0_12, %c0_13] : memref<8x512xf32, #tpu.memory_space<vmem>>, vector<8x32xf32>
      tpu.vector_store %arg6[%c0_12, %c0_13], %13 {strides = array<i32>} : memref<8x512xf32, #tpu.memory_space<vmem>>, vector<8x32xf32>,
      %c0_14 = arith.constant 0 : index
      %c32 = arith.constant 32 : index
      %15 = vector.load %arg4[%c0_14, %c32] : memref<1x512xf32, #tpu.memory_space<vmem>>, vector<1x32xf32>
      %16 = vector.broadcast %15 : vector<1x32xf32> to vector<8x32xf32>
      %17 = arith.addf %10, %16 : vector<8x32xf32>
      %c0_15 = arith.constant 0 : index
      %c32_16 = arith.constant 32 : index
      %18 = vector.load %arg6[%c0_15, %c32_16] : memref<8x512xf32, #tpu.memory_space<vmem>>, vector<8x32xf32>
      tpu.vector_store %arg6[%c0_15, %c32_16], %17 {strides = array<i32>} : memref<8x512xf32, #tpu.memory_space<vmem>>, vector<8x32xf32>,
      %c0_17 = arith.constant 0 : index
      %c64 = arith.constant 64 : index
      %19 = vector.load %arg4[%c0_17, %c64] : memref<1x512xf32, #tpu.memory_space<vmem>>, vector<1x32xf32>
      %20 = vector.broadcast %19 : vector<1x32xf32> to vector<8x32xf32>
      %21 = arith.addf %10, %20 : vector<8x32xf32>
      %c0_18 = arith.constant 0 : index
      %c64_19 = arith.constant 64 : index
      %22 = vector.load %arg6[%c0_18, %c64_19] : memref<8x512xf32, #tpu.memory_space<vmem>>, vector<8x32xf32>
      tpu.vector_store %arg6[%c0_18, %c64_19], %21 {strides = array<i32>} : memref<8x512xf32, #tpu.memory_space<vmem>>, vector<8x32xf32>,
      %c0_20 = arith.constant 0 : index
      %c96 = arith.constant 96 : index
      %23 = vector.load %arg4[%c0_20, %c96] : memref<1x512xf32, #tpu.memory_space<vmem>>, vector<1x32xf32>
      %24 = vector.broadcast %23 : vector<1x32xf32> to vector<8x32xf32>
      %25 = arith.addf %10, %24 : vector<8x32xf32>
      %c0_21 = arith.constant 0 : index
      %c96_22 = arith.constant 96 : index
      %26 = vector.load %arg6[%c0_21, %c96_22] : memref<8x512xf32, #tpu.memory_space<vmem>>, vector<8x32xf32>
      tpu.vector_store %arg6[%c0_21, %c96_22], %25 {strides = array<i32>} : memref<8x512xf32, #tpu.memory_space<vmem>>, vector<8x32xf32>,
      %c0_23 = arith.constant 0 : index
      %c128 = arith.constant 128 : index
      %27 = vector.load %arg4[%c0_23, %c128] : memref<1x512xf32, #tpu.memory_space<vmem>>, vector<1x32xf32>
      %28 = vector.broadcast %27 : vector<1x32xf32> to vector<8x32xf32>
      %29 = arith.addf %10, %28 : vector<8x32xf32>
      %c0_24 = arith.constant 0 : index
      %c128_25 = arith.constant 128 : index
      %30 = vector.load %arg6[%c0_24, %c128_25] : memref<8x512xf32, #tpu.memory_space<vmem>>, vector<8x32xf32>
      tpu.vector_store %arg6[%c0_24, %c128_25], %29 {strides = array<i32>} : memref<8x512xf32, #tpu.memory_space<vmem>>, vector<8x32xf32>,
      %c0_26 = arith.constant 0 : index
      %c160 = arith.constant 160 : index
      %31 = vector.load %arg4[%c0_26, %c160] : memref<1x512xf32, #tpu.memory_space<vmem>>, vector<1x32xf32>
      %32 = vector.broadcast %31 : vector<1x32xf32> to vector<8x32xf32>
      %33 = arith.addf %10, %32 : vector<8x32xf32>
      %c0_27 = arith.constant 0 : index
      %c160_28 = arith.constant 160 : index
      %34 = vector.load %arg6[%c0_27, %c160_28] : memref<8x512xf32, #tpu.memory_space<vmem>>, vector<8x32xf32>
      tpu.vector_store %arg6[%c0_27, %c160_28], %33 {strides = array<i32>} : memref<8x512xf32, #tpu.memory_space<vmem>>, vector<8x32xf32>,
      %c0_29 = arith.constant 0 : index
      %c192 = arith.constant 192 : index
      %35 = vector.load %arg4[%c0_29, %c192] : memref<1x512xf32, #tpu.memory_space<vmem>>, vector<1x32xf32>
      %36 = vector.broadcast %35 : vector<1x32xf32> to vector<8x32xf32>
      %37 = arith.addf %10, %36 : vector<8x32xf32>
      %c0_30 = arith.constant 0 : index
      %c192_31 = arith.constant 192 : index
      %38 = vector.load %arg6[%c0_30, %c192_31] : memref<8x512xf32, #tpu.memory_space<vmem>>, vector<8x32xf32>
      tpu.vector_store %arg6[%c0_30, %c192_31], %37 {strides = array<i32>} : memref<8x512xf32, #tpu.memory_space<vmem>>, vector<8x32xf32>,
      %c0_32 = arith.constant 0 : index
      %c224 = arith.constant 224 : index
      %39 = vector.load %arg4[%c0_32, %c224] : memref<1x512xf32, #tpu.memory_space<vmem>>, vector<1x32xf32>
      %40 = vector.broadcast %39 : vector<1x32xf32> to vector<8x32xf32>
      %41 = arith.addf %10, %40 : vector<8x32xf32>
      %c0_33 = arith.constant 0 : index
      %c224_34 = arith.constant 224 : index
      %42 = vector.load %arg6[%c0_33, %c224_34] : memref<8x512xf32, #tpu.memory_space<vmem>>, vector<8x32xf32>
      tpu.vector_store %arg6[%c0_33, %c224_34], %41 {strides = array<i32>} : memref<8x512xf32, #tpu.memory_space<vmem>>, vector<8x32xf32>,
      %c0_35 = arith.constant 0 : index
      %c256 = arith.constant 256 : index
      %43 = vector.load %arg4[%c0_35, %c256] : memref<1x512xf32, #tpu.memory_space<vmem>>, vector<1x32xf32>
      %44 = vector.broadcast %43 : vector<1x32xf32> to vector<8x32xf32>
      %45 = arith.addf %10, %44 : vector<8x32xf32>
      %c0_36 = arith.constant 0 : index
      %c256_37 = arith.constant 256 : index
      %46 = vector.load %arg6[%c0_36, %c256_37] : memref<8x512xf32, #tpu.memory_space<vmem>>, vector<8x32xf32>
      tpu.vector_store %arg6[%c0_36, %c256_37], %45 {strides = array<i32>} : memref<8x512xf32, #tpu.memory_space<vmem>>, vector<8x32xf32>,
      %c0_38 = arith.constant 0 : index
      %c288 = arith.constant 288 : index
      %47 = vector.load %arg4[%c0_38, %c288] : memref<1x512xf32, #tpu.memory_space<vmem>>, vector<1x32xf32>
      %48 = vector.broadcast %47 : vector<1x32xf32> to vector<8x32xf32>
      %49 = arith.addf %10, %48 : vector<8x32xf32>
      %c0_39 = arith.constant 0 : index
      %c288_40 = arith.constant 288 : index
      %50 = vector.load %arg6[%c0_39, %c288_40] : memref<8x512xf32, #tpu.memory_space<vmem>>, vector<8x32xf32>
      tpu.vector_store %arg6[%c0_39, %c288_40], %49 {strides = array<i32>} : memref<8x512xf32, #tpu.memory_space<vmem>>, vector<8x32xf32>,
      %c0_41 = arith.constant 0 : index
      %c320 = arith.constant 320 : index
      %51 = vector.load %arg4[%c0_41, %c320] : memref<1x512xf32, #tpu.memory_space<vmem>>, vector<1x32xf32>
      %52 = vector.broadcast %51 : vector<1x32xf32> to vector<8x32xf32>
      %53 = arith.addf %10, %52 : vector<8x32xf32>
      %c0_42 = arith.constant 0 : index
      %c320_43 = arith.constant 320 : index
      %54 = vector.load %arg6[%c0_42, %c320_43] : memref<8x512xf32, #tpu.memory_space<vmem>>, vector<8x32xf32>
      tpu.vector_store %arg6[%c0_42, %c320_43], %53 {strides = array<i32>} : memref<8x512xf32, #tpu.memory_space<vmem>>, vector<8x32xf32>,
      %c0_44 = arith.constant 0 : index
      %c352 = arith.constant 352 : index
      %55 = vector.load %arg4[%c0_44, %c352] : memref<1x512xf32, #tpu.memory_space<vmem>>, vector<1x32xf32>
      %56 = vector.broadcast %55 : vector<1x32xf32> to vector<8x32xf32>
      %57 = arith.addf %10, %56 : vector<8x32xf32>
      %c0_45 = arith.constant 0 : index
      %c352_46 = arith.constant 352 : index
      %58 = vector.load %arg6[%c0_45, %c352_46] : memref<8x512xf32, #tpu.memory_space<vmem>>, vector<8x32xf32>
      tpu.vector_store %arg6[%c0_45, %c352_46], %57 {strides = array<i32>} : memref<8x512xf32, #tpu.memory_space<vmem>>, vector<8x32xf32>,
      %c0_47 = arith.constant 0 : index
      %c384 = arith.constant 384 : index
      %59 = vector.load %arg4[%c0_47, %c384] : memref<1x512xf32, #tpu.memory_space<vmem>>, vector<1x32xf32>
      %60 = vector.broadcast %59 : vector<1x32xf32> to vector<8x32xf32>
      %61 = arith.addf %10, %60 : vector<8x32xf32>
      %c0_48 = arith.constant 0 : index
      %c384_49 = arith.constant 384 : index
      %62 = vector.load %arg6[%c0_48, %c384_49] : memref<8x512xf32, #tpu.memory_space<vmem>>, vector<8x32xf32>
      tpu.vector_store %arg6[%c0_48, %c384_49], %61 {strides = array<i32>} : memref<8x512xf32, #tpu.memory_space<vmem>>, vector<8x32xf32>,
      %c0_50 = arith.constant 0 : index
      %c416 = arith.constant 416 : index
      %63 = vector.load %arg4[%c0_50, %c416] : memref<1x512xf32, #tpu.memory_space<vmem>>, vector<1x32xf32>
      %64 = vector.broadcast %63 : vector<1x32xf32> to vector<8x32xf32>
      %65 = arith.addf %10, %64 : vector<8x32xf32>
      %c0_51 = arith.constant 0 : index
      %c416_52 = arith.constant 416 : index
      %66 = vector.load %arg6[%c0_51, %c416_52] : memref<8x512xf32, #tpu.memory_space<vmem>>, vector<8x32xf32>
      tpu.vector_store %arg6[%c0_51, %c416_52], %65 {strides = array<i32>} : memref<8x512xf32, #tpu.memory_space<vmem>>, vector<8x32xf32>,
      %c0_53 = arith.constant 0 : index
      %c448 = arith.constant 448 : index
      %67 = vector.load %arg4[%c0_53, %c448] : memref<1x512xf32, #tpu.memory_space<vmem>>, vector<1x32xf32>
      %68 = vector.broadcast %67 : vector<1x32xf32> to vector<8x32xf32>
      %69 = arith.addf %10, %68 : vector<8x32xf32>
      %c0_54 = arith.constant 0 : index
      %c448_55 = arith.constant 448 : index
      %70 = vector.load %arg6[%c0_54, %c448_55] : memref<8x512xf32, #tpu.memory_space<vmem>>, vector<8x32xf32>
      tpu.vector_store %arg6[%c0_54, %c448_55], %69 {strides = array<i32>} : memref<8x512xf32, #tpu.memory_space<vmem>>, vector<8x32xf32>,
      %c0_56 = arith.constant 0 : index
      %c480 = arith.constant 480 : index
      %71 = vector.load %arg4[%c0_56, %c480] : memref<1x512xf32, #tpu.memory_space<vmem>>, vector<1x32xf32>
      %72 = vector.broadcast %71 : vector<1x32xf32> to vector<8x32xf32>
      %73 = arith.addf %10, %72 : vector<8x32xf32>
      %c0_57 = arith.constant 0 : index
      %c480_58 = arith.constant 480 : index
      %74 = vector.load %arg6[%c0_57, %c480_58] : memref<8x512xf32, #tpu.memory_space<vmem>>, vector<8x32xf32>
      tpu.vector_store %arg6[%c0_57, %c480_58], %73 {strides = array<i32>} : memref<8x512xf32, #tpu.memory_space<vmem>>, vector<8x32xf32>,
    } else {
    }
    %c0 = arith.constant 0 : index
    %c0_1 = arith.constant 0 : index
    %c0_2 = arith.constant 0 : index
    %3 = vector.load %arg2[%c0, %c0_1, %c0_2] : memref<1x8x512xf32, #tpu.memory_space<vmem>>, vector<1x8x512xf32>
    %4 = vector.shape_cast %3 : vector<1x8x512xf32> to vector<8x512xf32>
    %c0_3 = arith.constant 0 : index
    %c0_4 = arith.constant 0 : index
    %5 = vector.load %arg6[%c0_3, %c0_4] : memref<8x512xf32, #tpu.memory_space<vmem>>, vector<8x512xf32>
    %6 = arith.addf %4, %5 : vector<8x512xf32>
    %c0_5 = arith.constant 0 : index
    %c0_6 = arith.constant 0 : index
    %c0_7 = arith.constant 0 : index
    %7 = vector.load %arg5[%c0_5, %c0_6, %c0_7] : memref<1x8x512xf32, #tpu.memory_space<vmem>>, vector<1x8x512xf32>
    %8 = vector.shape_cast %7 : vector<1x8x512xf32> to vector<8x512xf32>
    %9 = vector.shape_cast %6 : vector<8x512xf32> to vector<1x8x512xf32>
    tpu.vector_store %arg5[%c0_5, %c0_6, %c0_7], %9 {strides = array<i32>} : memref<1x8x512xf32, #tpu.memory_space<vmem>>, vector<1x8x512xf32>,
    return
  }
  func.func @transform_0(%arg0: i32, %arg1: i32) -> (i32, i32, i32) {
    %c0_i32 = arith.constant 0 : i32
    %c0_i32_0 = arith.constant 0 : i32
    return %arg1, %arg0, %c0_i32 : i32, i32, i32
  }
  func.func @transform_1(%arg0: i32, %arg1: i32) -> (i32, i32) {
    %c0_i32 = arith.constant 0 : i32
    %c0_i32_0 = arith.constant 0 : i32
    return %arg0, %c0_i32 : i32, i32
  }
  func.func @transform_2(%arg0: i32, %arg1: i32) -> (i32, i32) {
    %c0_i32 = arith.constant 0 : i32
    %c0_i32_0 = arith.constant 0 : i32
    %c0_i32_1 = arith.constant 0 : i32
    return %c0_i32, %c0_i32_0 : i32, i32
  }
  func.func @transform_3(%arg0: i32, %arg1: i32) -> (i32, i32, i32) {
    %c0_i32 = arith.constant 0 : i32
    %c0_i32_0 = arith.constant 0 : i32
    return %arg1, %arg0, %c0_i32 : i32, i32, i32
  }
}

</mosaic_0001>

<bundles_post_ra>
// kernel: tpu_custom_call.1
= control target key start
LH: loop header
LB: loop body
LE: loop exit
PB: predicated region body
PF: predicated region fallthrough
CT: control target
= control target key end

     0   :  { %8 = vsyncpa [#allocation4], 0  ;;  %s1059_s0 = inlined_call_operand.hbm [shape: f32[2,8,512], index: 0, kind: input, shape index: {}]   ;;  %s1060_s1 = inlined_call_operand.hbm [shape: f32[8,32], index: 1, kind: input, shape index: {}]   ;;  %s1061_s2 = inlined_call_operand.hbm [shape: f32[1,512], index: 2, kind: input, shape index: {}]   ;;  %s1062_s3 = inlined_call_operand.hbm [shape: f32[2,8,512], index: 3, kind: output, shape index: {}]  }
   0x1   :  { %10 = vsyncpa [#allocation4 + $0x1], 0 }
   0x2   :  { %11 = vsyncpa [#allocation7], 0 }
   0x3   :  { %12 = vsyncpa [#allocation5], 0 }
   0x4   :  { %14 = vsyncpa [#allocation5 + $0x1], 0  ;;  %s887_s12 = smov 0   ;;  %s889_s13 = smov 0  }
   0x5   :  { %s891_s14 = smov 0   ;;  %s893_s15 = smov 0  }
   0x6   :  { %s895_s16 = smov 0   ;;  %s897_s17 = smov 0  }
   0x7 LB: > { %s560_s18 = sadd.s32 4294967295, %s860_s17   ;;  %s561_s19 = sadd.s32 4294967294, %s860_s17   ;;  %s860_s17 = sphi %s897_s17, %s20_s17   ;;  %s856_s16 = sphi %s895_s16, %s1072_s16   ;;  %s852_s15 = sphi %s893_s15, %s1071_s15   ;;  %s848_s14 = sphi %s891_s14, %s1070_s14   ;;  %s844_s13 = sphi %s889_s13, %s1069_s13   ;;  %s840_s12 = sphi %s887_s12, %s1068_s12  }
   0x8   : > { %p54_p0 = scmp.ne.s32.totalorder %s844_s13, %s840_s12  ;;  %p921_p1 = scmp.eq.s32.totalorder %s560_s18, 0 }
   0x9   : > { %p133_p2 = scmp.eq.s32.totalorder %s561_s19, 1  ;;  %p562_p4 = scmp.ge.s32.totalorder %s860_s17, 1 }
   0xa   : > { %p927_p3 = por %p921_p1, %p54_p0  ;;  %p140_p6 = scmp.lt.s32.totalorder %s860_s17, 3 }
   0xb   : > { %p932_p5 = por %p133_p2, %p54_p0  ;;  %s154_s25 = sshll.u32 %s1060_s1, 4  ;;  %s155_s25 = int_to_ptr.hbm [resolvable:$true] %s154_s25 }
   0xc   : > { %p940_p7 = pnand %p562_p4, %p140_p6  ;;  %p565_p8 = scmp.ge.s32.totalorder %s860_s17, 2 }
   0xd   : > { %s862_s27 = smov [#allocation6]   ;;  %s166_s4 = sshll.u32 %s1061_s2, 4  ;;  %s167_s4 = int_to_ptr.hbm [resolvable:$true] %s166_s4 }
   0xe   : > { %p594_p9 = pneg %p940_p7  ;;  %s156_s28 = sshll.u32 %s862_s27, 4  ;;  %s157_s28 = int_to_ptr.vmem [resolvable:$true] %s156_s28 }
   0xf   : > { %s863_s5 = smov [#allocation8]   ;;  %p127_p11 = scmp.eq.s32.totalorder %s560_s18, 1 }
  0x10   : > { %p595_p10 = pnand %p594_p9, %p921_p1  ;;  %s168_s6 = sshll.u32 %s863_s5, 4  ;;  %s169_s6 = int_to_ptr.vmem [resolvable:$true] %s168_s6 }
  0x11   : > { %s29_s7 = sadd.s32 1, %s856_s16  ;;  %s41_s8 = sadd.s32 1, %s848_s14 }
  0x12   : > { %597 = dma.hbm_to_vmem [thread:$0]  (!%p595_p10), %s155_s25, 128, %s157_s28, [#allocation7]  }
  0x13   : > { %600 = dma.hbm_to_vmem [thread:$0]  (!%p595_p10), %s167_s4, 64, %s169_s6, [#allocation7]  }
  0x14   : > { %p30_p12 = scmp.ge.s32.totalorder %s29_s7, 2  ;;  %p48_p13 = scmp.ne.s32.totalorder %s848_s14, %s844_s13 }
  0x15   : > { %p49_p0 = scmp.eq.s32.totalorder %s860_s17, 0  ;;  %p611_p4 = scmp.lt.s32.totalorder %s860_s17, 2 }
  0x16   : > { %s1074_s7 = smov (%p30_p12, %s29_s7), 0  ;;  %p959_p2 = por %p127_p11, %p48_p13 }
  0x17   : > { %s36_s10 = ssub.s32 %s856_s16, %s1074_s7  ;;  %s179_s11 = sand.u32 1, %s848_s14  }
  0x18   : > { %p39_p6 = scmp.eq.s32.totalorder %s36_s10, 0  ;;  %p50_p9 = por %p49_p0, %p48_p13 }
  0x19   : > { %s566_s19 = sshll.u32 %s179_s11, 5  ;;  %s580_s18 = sshll.u32 %s856_s16, 5 }
  0x1a   : > { %s969_s23 = scalar_select %p39_p6, %s848_s14, %s41_s8  }
  0x1b   : > { %s190_s27 = scalar_lea.hbm %s1059_s0, %s580_s18  ;;  %s183_s29 = scalar_lea.vmem [#allocation3], %s566_s19 }
  0x1c   : > { %s192_s28 = sshll.u32 %s190_s27, 4  ;;  %s194_s30 = sshll.u32 %s183_s29, 4  ;;  %s193_s28 = int_to_ptr.hbm [resolvable:$true] %s192_s28  ;;  %s195_s30 = int_to_ptr.vmem [resolvable:$true] %s194_s30 }
  0x1d   : > { %p602_p10 = pnand %p611_p4, %p50_p9  ;;  %s180_s4 = scalar_lea.sflag [#allocation4], %s179_s11 }
  0x1e   : > { %203 = sbr.rel (%p940_p7) target bundleno = 326 (0x146), region = 32  ;;  %s979_s5 = sand.u32 (!%p940_p7), 1, %s844_s13  }
  0x1f   : > { %604 = dma.hbm_to_vmem [thread:$0]  (!%p602_p10), %s193_s28, 512, %s195_s30, %s180_s4  }
  0x20   : > { %s570_s6 = sshll.u32 (!%p940_p7), %s979_s5, 5  ;;  %s206_s8 = scalar_lea.sflag (!%p940_p7), [#allocation4], %s979_s5 }
  0x21   : > { %s983_s10 = scalar_lea.vmem (!%p940_p7), [#allocation3], %s570_s6 }
  0x23   : > { %827 = dma.done.wait (%p927_p3), %s206_s8, 512  }
  0x24   : > { %829 = vsyncadd (%p927_p3), %s206_s8, 4294966784 }
  0x25   : > { %831 = dma.done.wait (%p921_p1), [#allocation7], 192  }
  0x26   : > { %833 = vsyncadd (%p921_p1), [#allocation7], 4294967104  ;;  %s993_s26 = scalar_lea.vmem [#allocation9], %s570_s6  ;;  %p574_p7 = scmp.ne.s32.totalorder %s852_s15, 0 }
  0x27   : > { %s864_s11 = smov (!%p574_p7), 96   ;;  %s865_s21 = smov (!%p574_p7), 64  }
  0x28   : > { %246 = sbr.rel (%p574_p7) target bundleno = 311 (0x137), region = 48  ;;  %s866_s20 = smov (!%p574_p7), 32  }
  0x2d   : > { %v668_v0 = vld [vmem:[#allocation8] ss:$0 sm:$0xff]  ;;  %v669_v1 = vld [vmem:[#allocation8 + $0x2] ss:$0 sm:$0xff]  ;;  %v670_v2 = vld [vmem:[#allocation8 + $0x1] ss:$0 sm:$0xff] }
  0x2e   : > { %258 = vrot.lane.b32.xlu0 %v668_v0, %s864_s11  ;;  %345 = vrot.lane.b32.xlu1 %v669_v1, %s864_s11  ;;  %v676_v3 = vld [vmem:[#allocation8] ss:$0 sm:$0xff]  ;;  %v671_v4 = vld [vmem:[#allocation8 + $0x3] ss:$0 sm:$0xff]  ;;  %v677_v5 = vld [vmem:[#allocation8 + $0x1] ss:$0 sm:$0xff] }
  0x2f   : > { %271 = vrot.lane.b32.xlu2 %v676_v3, %s865_s21  ;;  %v673_v6 = vld [vmem:[#allocation8 + $0x2] ss:$0 sm:$0xff]  ;;  %v672_v7 = vld [vmem:[#allocation8 + $0x3] ss:$0 sm:$0xff]  ;;  %v678_v8 = vld [vmem:[#allocation8] ss:$0 sm:$0xff] }
  0x30   : > { %v675_v9 = vld [vmem:[#allocation8 + $0x1] ss:$0 sm:$0xff]  ;;  %v674_v10 = vld [vmem:[#allocation8 + $0x2] ss:$0 sm:$0xff]  ;;  %v679_v11 = vld [vmem:[#allocation8 + $0x3] ss:$0 sm:$0xff] }
  0x31   : > { %v247_v13 = vld [vmem:[#allocation6] sm:$0xff]  ;;  %v680_v37 = vld [vmem:[#allocation8 + $0x2] ss:$0 sm:$0xff]  ;;  %vm253_vm0 = vcmask 261120   ;;  %v681_v39 = vld [vmem:[#allocation8] ss:$0 sm:$0xff] }
  0x32   : > { %v340_v38 = vadd.f32 %v680_v37, %v247_v13  ;;  %v252_v40 = vadd.f32 %v681_v39, %v247_v13  ;;  %v682_v41 = vld [vmem:[#allocation8 + $0x1] ss:$0 sm:$0xff]  ;;  %vm266_vm1 = vcmask 523520   ;;  %v683_v44 = vld [vmem:[#allocation8 + $0x3] ss:$0 sm:$0xff]  ;;  %vm279_vm2 = vcmask 785920  }
  0x33   : > { %v298_v42 = vadd.f32 %v682_v41, %v247_v13  ;;  %v382_v45 = vadd.f32 %v683_v44, %v247_v13  ;;  %vm292_vm3 = vcmask 1048320  }
  0x34   : > { %341 = vst.msk [vmem:[#allocation2 + $0x10] sm:$0xff] %vm253_vm0, %v340_v38 }
  0x35   : > { %254 = vst.msk [vmem:[#allocation2] sm:$0xff] %vm253_vm0, %v252_v40 }
  0x36   : > { %303 = vrot.lane.b32.xlu0 %v670_v2, %s864_s11  ;;  %387 = vrot.lane.b32.xlu1 %v671_v4, %s864_s11  ;;  %299 = vst.msk [vmem:[#allocation2 + $0x8] sm:$0xff] %vm253_vm0, %v298_v42 }
  0x37   : > { %315 = vrot.lane.b32.xlu2 %v677_v5, %s865_s21  ;;  %383 = vst.msk [vmem:[#allocation2 + $0x18] sm:$0xff] %vm253_vm0, %v382_v45 }
  0x3e   : > { %357 = vrot.lane.b32.xlu0 %v673_v6, %s865_s21  ;;  %399 = vrot.lane.b32.xlu1 %v672_v7, %s865_s21 }
  0x3f   : > { %284 = vrot.lane.b32.xlu2 %v678_v8, %s866_s20 }
  0x46   : > { %327 = vrot.lane.b32.xlu0 %v675_v9, %s866_s20  ;;  %369 = vrot.lane.b32.xlu1 %v674_v10, %s866_s20 }
  0x47   : > { %411 = vrot.lane.b32.xlu2 %v679_v11, %s866_s20 }
  0x89   : > { %v272_v12 = vpop.permute.xlu2 %271 }
  0x8a   : > { %v274_v25 = vadd.f32 %v272_v12, %v247_v13 }
  0x91   : > { %v316_v18 = vpop.permute.xlu2 %315 }
  0x92   : > { %v318_v20 = vadd.f32 %v316_v18, %v247_v13 }
  0x99   : > { %v285_v24 = vpop.permute.xlu2 %284 }
  0x9a   : > { %v287_v27 = vadd.f32 %v285_v24, %v247_v13 }
  0xa0   : > { %v259_v14 = vpop.permute.xlu0 %258  ;;  %v346_v16 = vpop.permute.xlu1 %345 }
  0xa1   : > { %v261_v15 = vadd.f32 %v259_v14, %v247_v13  ;;  %v348_v17 = vadd.f32 %v346_v16, %v247_v13  ;;  %v412_v30 = vpop.permute.xlu2 %411 }
  0xa2   : > { %v414_v33 = vadd.f32 %v412_v30, %v247_v13 }
  0xa3   : > { %263 = vrot.lane.b32.xlu0 %v261_v15, %s866_s20  ;;  %350 = vrot.lane.b32.xlu2 %v348_v17, %s866_s20 }
  0xa8   : > { %v304_v19 = vpop.permute.xlu0 %303  ;;  %v388_v22 = vpop.permute.xlu1 %387 }
  0xa9   : > { %v306_v21 = vadd.f32 %v304_v19, %v247_v13  ;;  %v390_v23 = vadd.f32 %v388_v22, %v247_v13 }
  0xab   : > { %308 = vrot.lane.b32.xlu1 %v306_v21, %s866_s20  ;;  %392 = vrot.lane.b32.xlu0 %v390_v23, %s866_s20 }
  0xac   : > { %320 = vrot.lane.b32.xlu2 %v318_v20, %s865_s21 }
  0xb0   : > { %v358_v26 = vpop.permute.xlu0 %357  ;;  %v400_v29 = vpop.permute.xlu1 %399 }
  0xb1   : > { %v360_v28 = vadd.f32 %v358_v26, %v247_v13  ;;  %v402_v31 = vadd.f32 %v400_v29, %v247_v13 }
  0xb3   : > { %276 = vrot.lane.b32.xlu1 %v274_v25, %s865_s21  ;;  %362 = vrot.lane.b32.xlu0 %v360_v28, %s865_s21 }
  0xb4   : > { %289 = vrot.lane.b32.xlu2 %v287_v27, %s864_s11 }
  0xb8   : > { %v328_v32 = vpop.permute.xlu0 %327  ;;  %v370_v35 = vpop.permute.xlu1 %369 }
  0xb9   : > { %v330_v34 = vadd.f32 %v328_v32, %v247_v13  ;;  %v372_v36 = vadd.f32 %v370_v35, %v247_v13 }
  0xbb   : > { %404 = vrot.lane.b32.xlu1 %v402_v31, %s865_s21  ;;  %332 = vrot.lane.b32.xlu0 %v330_v34, %s864_s11 }
  0xbc   : > { %416 = vrot.lane.b32.xlu2 %v414_v33, %s864_s11 }
  0xc3   : > { %374 = vrot.lane.b32.xlu1 %v372_v36, %s864_s11 }
  0xfd   : > { %v351_v43 = vpop.permute.xlu2 %350 }
  0xfe   : > { %353 = vst.msk [vmem:[#allocation2 + $0x10] sm:$0xff] %vm266_vm1, %v351_v43 }
 0x106   : > { %v321_v47 = vpop.permute.xlu2 %320 }
 0x10e   : > { %v290_v50 = vpop.permute.xlu2 %289 }
 0x115   : > { %v264_v46 = vpop.permute.xlu0 %263 }
 0x116   : > { %267 = vst.msk [vmem:[#allocation2] sm:$0xff] %vm266_vm1, %v264_v46  ;;  %v417_v53 = vpop.permute.xlu2 %416 }
 0x11d   : > { %v309_v48 = vpop.permute.xlu1 %308  ;;  %v393_v49 = vpop.permute.xlu0 %392 }
 0x11e   : > { %311 = vst.msk [vmem:[#allocation2 + $0x8] sm:$0xff] %vm266_vm1, %v309_v48 }
 0x11f   : > { %323 = vst.msk [vmem:[#allocation2 + $0x8] sm:$0xff] %vm279_vm2, %v321_v47 }
 0x120   : > { %395 = vst.msk [vmem:[#allocation2 + $0x18] sm:$0xff] %vm266_vm1, %v393_v49 }
 0x125   : > { %v277_v51 = vpop.permute.xlu1 %276  ;;  %v363_v52 = vpop.permute.xlu0 %362 }
 0x126   : > { %280 = vst.msk [vmem:[#allocation2] sm:$0xff] %vm279_vm2, %v277_v51 }
 0x127   : > { %293 = vst.msk [vmem:[#allocation2] sm:$0xff] %vm292_vm3, %v290_v50 }
 0x128   : > { %365 = vst.msk [vmem:[#allocation2 + $0x10] sm:$0xff] %vm279_vm2, %v363_v52 }
 0x12d   : > { %v405_v54 = vpop.permute.xlu1 %404  ;;  %v333_v55 = vpop.permute.xlu0 %332 }
 0x12e   : > { %407 = vst.msk [vmem:[#allocation2 + $0x18] sm:$0xff] %vm279_vm2, %v405_v54 }
 0x12f   : > { %419 = vst.msk [vmem:[#allocation2 + $0x18] sm:$0xff] %vm292_vm3, %v417_v53 }
 0x130   : > { %335 = vst.msk [vmem:[#allocation2 + $0x8] sm:$0xff] %vm292_vm3, %v333_v55 }
 0x135   : > { %v375_v56 = vpop.permute.xlu1 %374 }
 0x136   : > { %377 = vst.msk [vmem:[#allocation2 + $0x10] sm:$0xff] %vm292_vm3, %v375_v56 }
 0x137 PF: > { %v420_v57 = vld [vmem:[%s983_s10] sm:$0xff]  ;;  %v421_v59 = vld [vmem:[%s983_s10 + $0x8] sm:$0xff]  ;;  %s581_s19 = sshll.u32 %s852_s15, 5  ;;  %v422_v62 = vld [vmem:[%s983_s10 + $0x10] sm:$0xff]  ;;  %s452_s27 = sshll.u32 %s993_s26, 4  ;;  %s453_s27 = int_to_ptr.vmem [resolvable:$true] %s452_s27 }
 0x138   : > { %v424_v58 = vld [vmem:[#allocation2] sm:$0xff]  ;;  %v425_v61 = vld [vmem:[#allocation2 + $0x8] sm:$0xff]  ;;  %s450_s25 = scalar_lea.hbm %s1062_s3, %s581_s19  ;;  %v423_v2 = vld [vmem:[%s983_s10 + $0x18] sm:$0xff]  ;;  %s437_s15 = scalar_lea.sflag [#allocation5], %s979_s5 }
 0x139   : > { %v428_v60 = vadd.f32 %v424_v58, %v420_v57  ;;  %v429_v0 = vadd.f32 %v425_v61, %v421_v59  ;;  %v427_v3 = vld [vmem:[#allocation2 + $0x18] sm:$0xff]  ;;  %s454_s28 = sshll.u32 %s450_s25, 4  ;;  %s794_s8 = scalar_lea.hbm %s1062_s3, 64  ;;  %s455_s28 = int_to_ptr.hbm [resolvable:$true] %s454_s28 }
 0x13a   : > { %v431_v4 = vadd.f32 %v427_v3, %v423_v2  ;;  %s788_s29 = sshra.s32 %s455_s28, 4  ;;  %s789_s29 = int_to_ptr.hbm [resolvable:$true] %s788_s29 }
 0x13b   : > { %432 = vst [vmem:[%s993_s26] sm:$0xff] %v428_v60  ;;  %s790_s30 = scalar_lea.hbm %s789_s29, 32  ;;  %p795_p12 = scmp.lt.s32.totalorder %s789_s29, %s1062_s3 }
 0x13c   : > { %433 = vst [vmem:[%s993_s26 + $0x8] sm:$0xff] %v429_v0  ;;  %p791_p1 = scmp.ne.s32.totalorder %s789_s29, %s790_s30  ;;  %p796_p13 = scmp.lt.s32.totalorder %s794_s8, %s790_s30 }
 0x13d   : > { %v426_v63 = vld [vmem:[#allocation2 + $0x10] sm:$0xff]  ;;  %435 = vst [vmem:[%s993_s26 + $0x18] sm:$0xff] %v431_v4 }
 0x13e   : > { %v430_v1 = vadd.f32 %v426_v63, %v422_v62  ;;  %p792_p3 = pnand %p791_p1, %p959_p2  ;;  %p797_p0 = por %p796_p13, %p795_p12 }
 0x140   : > { %434 = vst [vmem:[%s993_s26 + $0x10] sm:$0xff] %v430_v1  ;;  %p793_p11 = pneg %p792_p3 }
 0x142   : > { %p798_p4 = pnand %p797_p0, %p793_p11 }
 0x144   : > { %801 = shalt.err (!%p798_p4)
}
 0x145   : > { %592 = dma.vmem_to_hbm [thread:$0]  (%p959_p2), %s453_s27, 512, %s455_s28, %s437_s15  }
 0x146 PF: > { %s466_s5 = sand.u32 1, %s840_s12   ;;  %p606_p6 = pnand %p565_p8, %p932_p5 }
 0x147   : > { %s467_s26 = scalar_lea.sflag [#allocation5], %s466_s5 }
 0x148   : > { %p607_p9 = pneg %p606_p6 }
 0x14a   : > { %835 = dma.done.wait (%p607_p9), %s467_s26, 512  }
 0x14b   : > { %837 = vsyncadd (%p607_p9), %s467_s26, 4294966784  ;;  %s20_s17 = sadd.s32 1, %s860_s17   ;;  %s1068_s12 = smov %s844_s13 }
 0x14c   : > { %p17_p10 = scmp.ge.s32.totalorder %s20_s17, 4   ;;  %s1069_s13 = smov %s848_s14 }
 0x14d   : > { %s1070_s14 = smov %s969_s23  ;;  %s1071_s15 = smov %s856_s16 }
 0x14e   : > { %s1072_s16 = smov %s1074_s7  ;;  %19 = sbr.rel (!%p17_p10) target bundleno = 7 (0x7), region = 90 }
 0x153   :  { %473 = vsyncpa [#allocation4], 1 }
 0x154   :  { %475 = vsyncpa [#allocation4 + $0x1], 1 }
 0x155   :  { %476 = vsyncpa [#allocation7], 1 }
 0x156   :  { %477 = vsyncpa [#allocation5], 1 }
 0x157   :  { %479 = vsyncpa [#allocation5 + $0x1], 1 }

</bundles_post_ra>
